<compile_context>
chip_gen: v5e
topology: v5e:2x2
jax: 0.10.0
libtpu: 0.0.40
codegen_flags: <defaults>
</compile_context>

<pallas_src>
import functools

import jax
import jax.numpy as jnp
from jax import lax
from jax.experimental import pallas as pl
from jax.experimental.pallas import tpu as pltpu

LANES = 128
SUBLANES = 8
_ALIGN = SUBLANES * LANES  # 1024


def _mse_kernel(y_ref, p_ref, o_ref, acc_ref, *,
                tile_rows, chunk_rows, blocks_per_core, rows, needs_mask):
    i = pl.program_id(1)  # reduction axis (per-core block index)

    # Zero this core's vector accumulator on its first block.
    @pl.when(i == 0)
    def _():
        acc_ref[...] = jnp.zeros_like(acc_ref)

    n_chunks = tile_rows // chunk_rows

    def accumulate(masked, base_row):
        # Chunked accumulate straight into acc_ref bounds live ranges (no
        # giant fused diff/square/reduce over the whole tile).
        def body(ci, carry):
            r0 = pl.multiple_of(ci * chunk_rows, chunk_rows)
            d = (y_ref[pl.ds(r0, chunk_rows), :].astype(jnp.float32)
                 - p_ref[pl.ds(r0, chunk_rows), :].astype(jnp.float32))
            dd = d * d
            if masked:
                row_ids = (base_row + r0) + lax.broadcasted_iota(
                    jnp.int32, (chunk_rows, LANES), 0)
                dd = jnp.where(row_ids < rows, dd, 0.0)
            acc_ref[...] += jnp.sum(
                dd.reshape(chunk_rows // SUBLANES, SUBLANES, LANES), axis=0)
            return carry

        lax.fori_loop(0, n_chunks, body, 0, unroll=True)

    if needs_mask:
        # Only edge / overhang blocks pay for iota + cmp + select; interior
        # blocks take the plain unmasked path.
        c = pl.program_id(0)
        base_row = (c * blocks_per_core + i) * tile_rows
        is_edge = base_row + tile_rows > rows

        @pl.when(is_edge)
        def _():
            accumulate(True, base_row)

        @pl.when(jnp.logical_not(is_edge))
        def _():
            accumulate(False, 0)
    else:
        accumulate(False, 0)

    # Single cross-lane/sublane reduction per core, on its last block.
    @pl.when(i == pl.num_programs(1) - 1)
    def _():
        o_ref[0, 0] = jnp.sum(acc_ref[...])


def _device_kind():
    try:
        return jax.devices()[0].device_kind.lower()
    except Exception:
        return ""


def _is_v7x(kind):
    return ("v7" in kind) or ("7x" in kind)


def _default_num_cores():
    # Only v7x has 2 TensorCores visible to one pallas_call; v5e/v6e have 1,
    # where a 2-wide "parallel" axis is just a serial loop with extra overhead.
    return 2 if _is_v7x(_device_kind()) else 1


def _default_max_tile_rows():
    # 4 MiB f32 per input per buffer on v7x (faster per-TC HBM => amortise the
    # ~0.35us/step fixed overhead harder); 2 MiB elsewhere.
    return 8192 if _is_v7x(_device_kind()) else 4096


def mse_loss(y, preds, *, max_tile_rows=None, num_cores=None):
    assert y.shape == preds.shape, "y and preds must have the same shape"
    n = y.size
    assert n > 0, "mse_loss of an empty tensor is undefined"

    if num_cores is None:
        num_cores = _default_num_cores()
    if max_tile_rows is None:
        max_tile_rows = _default_max_tile_rows()

    yf = jnp.ravel(y)
    pf = jnp.ravel(preds)

    # Aligned prefix goes through the kernel via a zero-copy (rows, 128) view;
    # the < 1024-element remainder is summed wrapper-side (no full-array pad).
    n_main = n - (n % _ALIGN)
    tail_sum = jnp.float32(0.0)
    if n_main < n:
        yt = yf[n_main:].astype(jnp.float32)
        pt = pf[n_main:].astype(jnp.float32)
        tail_sum = jnp.sum((yt - pt) * (yt - pt))
        if n_main == 0:
            return tail_sum / n
        # TODO(synk): for n not divisible by 1024 this prefix slice still
        # materialises one copy of the aligned part; a fully zero-copy variant
        # would need element-granular (1-D) blocks over the unsliced array.
        yf = yf[:n_main]
        pf = pf[:n_main]

    rows = n_main // LANES  # multiple of 8
    y2 = yf.reshape(rows, LANES)
    p2 = pf.reshape(rows, LANES)

    tile_rows = min(rows, max_tile_rows)
    # Chunked per-tile reduce: 512-row chunks when they divide the tile (the
    # multi-block case), otherwise a single chunk (small single-block arrays).
    chunk_rows = 512 if (tile_rows > 512 and tile_rows % 512 == 0) else tile_rows

    num_blocks = pl.cdiv(rows, tile_rows)
    num_cores = max(1, min(num_cores, num_blocks))
    blocks_per_core = pl.cdiv(num_blocks, num_cores)
    # Mask needed only when nominal (cores x blocks x tile_rows) coverage
    # exceeds the real row count (partial tail block or overhang programs).
    needs_mask = (num_cores * blocks_per_core * tile_rows != rows)

    def in_index_map(c, i):
        # Clamp overhang programs onto the last valid block; their contribution
        # is zeroed by the in-kernel row mask.
        return (jnp.minimum(c * blocks_per_core + i, num_blocks - 1), 0)

    kernel = functools.partial(
        _mse_kernel,
        tile_rows=tile_rows,
        chunk_rows=chunk_rows,
        blocks_per_core=blocks_per_core,
        rows=rows,
        needs_mask=needs_mask,
    )

    # 3-deep input buffering only pays off on long streams; keep defaults for
    # 1-2 block cases.
    spec_kwargs = {}
    if blocks_per_core > 2:
        spec_kwargs = dict(pipeline_mode=pl.Buffered(3))

    bytes_accessed = (y2.size * y2.dtype.itemsize
                      + p2.size * p2.dtype.itemsize
                      + num_cores * 4)

    partials = pl.pallas_call(
        kernel,
        out_shape=jax.ShapeDtypeStruct((num_cores, 1), jnp.float32),
        grid_spec=pltpu.PrefetchScalarGridSpec(
            num_scalar_prefetch=0,
            grid=(num_cores, blocks_per_core),
            in_specs=[
                pl.BlockSpec((tile_rows, LANES), in_index_map, **spec_kwargs),
                pl.BlockSpec((tile_rows, LANES), in_index_map, **spec_kwargs),
            ],
            out_specs=pl.BlockSpec(
                (1, 1), lambda c, i: (c, 0),
                memory_space=pltpu.MemorySpace.SMEM,
            ),
            scratch_shapes=[pltpu.VMEM((SUBLANES, LANES), jnp.float32)],
        ),
        compiler_params=pltpu.CompilerParams(
            dimension_semantics=("parallel", "arbitrary"),
            vmem_limit_bytes=32 * 1024 * 1024,
        ),
        cost_estimate=pl.CostEstimate(
            flops=3 * n_main,
            transcendentals=0,
            bytes_accessed=int(bytes_accessed),
        ),
    )(y2, p2)

    # Combine per-core partial sums + wrapper tail, take the mean.
    return (jnp.sum(partials) + tail_sum) / n


if __name__ == "__main__":
    key = jax.random.PRNGKey(0)
    k1, k2, k3, k4, k5, k6 = jax.random.split(key, 6)

    # Primary test: small shape consistent with the module's forward.
    shape = (2, 4, 16, 16)
    y = jax.random.normal(k1, shape, dtype=jnp.float32)
    preds = jax.random.normal(k2, shape, dtype=jnp.float32)
    loss = jax.block_until_ready(mse_loss(y, preds))
    ref = jnp.mean((y - preds) ** 2)
    assert jnp.allclose(loss, ref, rtol=1e-5, atol=1e-6), (loss, ref)

    # Multi-block path with per-core split + gated edge-block masking.
    shape2 = (2, 4, 256, 257)  # 526336 elems -> rows=4112 -> partial last block
    y2 = jax.random.normal(k3, shape2, dtype=jnp.float32)
    p2 = jax.random.normal(k4, shape2, dtype=jnp.float32)
    loss2 = jax.block_until_ready(mse_loss(y2, p2))
    ref2 = jnp.mean((y2 - p2) ** 2)
    assert jnp.allclose(loss2, ref2, rtol=1e-4, atol=1e-6), (loss2, ref2)

    # Odd size: exercises the wrapper-side tail (< 1024 leftover elements).
    shape3 = (3, 347)  # 1041 elems -> 1024 in-kernel + 17 wrapper tail
    y3 = jax.random.normal(k5, shape3, dtype=jnp.float32)
    p3 = jax.random.normal(k6, shape3, dtype=jnp.float32)
    loss3 = jax.block_until_ready(mse_loss(y3, p3))
    ref3 = jnp.mean((y3 - p3) ** 2)
    assert jnp.allclose(loss3, ref3, rtol=1e-5, atol=1e-6), (loss3, ref3)

    print("KERNEL_OK")
</pallas_src>

<mosaic_0001>
module attributes {stable_mosaic.version = 11 : i64} {
  func.func @_mse_kernel(%arg0: i32, %arg1: i32, %arg2: memref<16x128xf32, #tpu.memory_space<vmem>>, %arg3: memref<16x128xf32, #tpu.memory_space<vmem>>, %arg4: memref<1x1xf32, #tpu.memory_space<smem>>, %arg5: memref<8x128xf32, #tpu.memory_space<vmem>>) attributes {dimension_semantics = [#tpu.dimension_semantics<parallel>, #tpu.dimension_semantics<arbitrary>], iteration_bounds = array<i64: 1, 1>, scalar_prefetch = 0 : i64, scratch_operands = 1 : i64, tpu.core_type = #tpu.core_type<tc>, window_params = [{transform_indices = @transform_0, window_bounds = array<i64: 16, 128>}, {transform_indices = @transform_1, window_bounds = array<i64: 16, 128>}, {transform_indices = @transform_2, window_bounds = array<i64: 1, 1>}]} {
    %c0_i32 = arith.constant 0 : i32
    %0 = arith.cmpi eq, %arg1, %c0_i32 : i32
    %1 = arith.extui %0 : i1 to i32
    %c0_i32_0 = arith.constant 0 : i32
    %2 = arith.cmpi ne, %1, %c0_i32_0 : i32
    scf.if %2 {
      %cst_9 = arith.constant 0.000000e+00 : f32
      %19 = vector.broadcast %cst_9 : f32 to vector<8x128xf32>
      %c0_10 = arith.constant 0 : index
      %c0_11 = arith.constant 0 : index
      %20 = vector.load %arg5[%c0_10, %c0_11] : memref<8x128xf32, #tpu.memory_space<vmem>>, vector<8x128xf32>
      tpu.vector_store %arg5[%c0_10, %c0_11], %19 {strides = array<i32>} : memref<8x128xf32, #tpu.memory_space<vmem>>, vector<8x128xf32>,
    } else {
    }
    %c0_i32_1 = arith.constant 0 : i32
    %c16_i32 = arith.constant 16 : i32
    %3 = arith.muli %c0_i32_1, %c16_i32 : i32
    %4 = tpu.assume_multiple %3, 16 : i32
    %5 = arith.index_cast %4 : i32 to index
    %c0 = arith.constant 0 : index
    %6 = vector.load %arg2[%5, %c0] : memref<16x128xf32, #tpu.memory_space<vmem>>, vector<16x128xf32>
    %7 = arith.index_cast %4 : i32 to index
    %c0_2 = arith.constant 0 : index
    %8 = vector.load %arg3[%7, %c0_2] : memref<16x128xf32, #tpu.memory_space<vmem>>, vector<16x128xf32>
    %9 = arith.subf %6, %8 : vector<16x128xf32>
    %10 = arith.mulf %9, %9 : vector<16x128xf32>
    %c0_3 = arith.constant 0 : index
    %c0_4 = arith.constant 0 : index
    %11 = vector.load %arg5[%c0_3, %c0_4] : memref<8x128xf32, #tpu.memory_space<vmem>>, vector<8x128xf32>
    %12 = vector.shape_cast %10 : vector<16x128xf32> to vector<2x8x128xf32>
    %cst = arith.constant dense<0.000000e+00> : vector<8x128xf32>
    %13 = vector.multi_reduction <add>, %12, %cst [0] : vector<2x8x128xf32> to vector<8x128xf32>
    %14 = arith.addf %11, %13 : vector<8x128xf32>
    %c0_5 = arith.constant 0 : index
    %c0_6 = arith.constant 0 : index
    %15 = vector.load %arg5[%c0_5, %c0_6] : memref<8x128xf32, #tpu.memory_space<vmem>>, vector<8x128xf32>
    tpu.vector_store %arg5[%c0_5, %c0_6], %14 {strides = array<i32>} : memref<8x128xf32, #tpu.memory_space<vmem>>, vector<8x128xf32>,
    %c1_i32 = arith.constant 1 : i32
    %c0_i32_7 = arith.constant 0 : i32
    %16 = arith.cmpi eq, %arg1, %c0_i32_7 : i32
    %17 = arith.extui %16 : i1 to i32
    %c0_i32_8 = arith.constant 0 : i32
    %18 = arith.cmpi ne, %17, %c0_i32_8 : i32
    scf.if %18 {
      %c0_9 = arith.constant 0 : index
      %c0_10 = arith.constant 0 : index
      %19 = vector.load %arg5[%c0_9, %c0_10] : memref<8x128xf32, #tpu.memory_space<vmem>>, vector<8x128xf32>
      %20 = vector.shape_cast %19 : vector<8x128xf32> to vector<1x8x128xf32>
      %cst_11 = arith.constant dense<0.000000e+00> : vector<1xf32>
      %21 = vector.multi_reduction <add>, %20, %cst_11 [1, 2] : vector<1x8x128xf32> to vector<1xf32>
      %22 = vector.shape_cast %21 : vector<1xf32> to vector<1x1x1xf32>
      %23 = vector.extract %22[0, 0, 0] : f32 from vector<1x1x1xf32>
      %c0_12 = arith.constant 0 : index
      %c0_13 = arith.constant 0 : index
      %24 = memref.load %arg4[%c0_12, %c0_13] : memref<1x1xf32, #tpu.memory_space<smem>>
      memref.store %23, %arg4[%c0_12, %c0_13] : memref<1x1xf32, #tpu.memory_space<smem>>
    } else {
    }
    return
  }
  func.func @transform_0(%arg0: i32, %arg1: i32) -> (i32, i32) {
    %c1_i32 = arith.constant 1 : i32
    %0 = arith.muli %arg0, %c1_i32 : i32
    %1 = arith.addi %0, %arg1 : i32
    %c0_i32 = arith.constant 0 : i32
    %2 = arith.minsi %1, %c0_i32 : i32
    %c0_i32_0 = arith.constant 0 : i32
    %c0_i32_1 = arith.constant 0 : i32
    return %2, %c0_i32_0 : i32, i32
  }
  func.func @transform_1(%arg0: i32, %arg1: i32) -> (i32, i32) {
    %c1_i32 = arith.constant 1 : i32
    %0 = arith.muli %arg0, %c1_i32 : i32
    %1 = arith.addi %0, %arg1 : i32
    %c0_i32 = arith.constant 0 : i32
    %2 = arith.minsi %1, %c0_i32 : i32
    %c0_i32_0 = arith.constant 0 : i32
    %c0_i32_1 = arith.constant 0 : i32
    return %2, %c0_i32_0 : i32, i32
  }
  func.func @transform_2(%arg0: i32, %arg1: i32) -> (i32, i32) {
    %c0_i32 = arith.constant 0 : i32
    %c0_i32_0 = arith.constant 0 : i32
    return %arg0, %c0_i32 : i32, i32
  }
}

</mosaic_0001>

<bundles_post_ra>
// kernel: tpu_custom_call.1
= control target key start
LH: loop header
LB: loop body
LE: loop exit
PB: predicated region body
PF: predicated region fallthrough
CT: control target
= control target key end

     0   :  { %7 = vsyncpa [#allocation4], 0  ;;  %s219_s0 = inlined_call_operand.hbm [shape: f32[16,128], index: 0, kind: input, shape index: {}]   ;;  %s220_s1 = inlined_call_operand.hbm [shape: f32[16,128], index: 1, kind: input, shape index: {}]   ;;  %s221_s2 = inlined_call_operand.hbm [shape: f32[1,1], index: 2, kind: output, shape index: {}]  }
   0x1   :  { %8 = vsyncpa [#allocation7], 0 }
   0x2   :  { %9 = vsyncpa [#allocation5], 0  ;;  %s20_s11 = sshll.u32 %s219_s0, 4  ;;  %s190_s12 = smov [#allocation3]   ;;  %s21_s11 = int_to_ptr.hbm [resolvable:$true] %s20_s11 }
   0x3   :  { %s22_s13 = sshll.u32 %s190_s12, 4  ;;  %s39_s16 = sshll.u32 %s220_s1, 4  ;;  %s23_s13 = int_to_ptr.vmem [resolvable:$true] %s22_s13  ;;  %s40_s16 = int_to_ptr.hbm [resolvable:$true] %s39_s16 }
   0x4   :  { %s191_s17 = smov 128   ;;  %s192_s18 = smov 8  }
   0x5   :  { %28 = dma.hbm_to_vmem [thread:$0]  %s21_s11, 256, %s23_s13, [#allocation4], %s191_s17, %s191_s17, %s192_s18  }
   0x6   :  { %s193_s19 = smov [#allocation6]  }
   0x7   :  { %s41_s20 = sshll.u32 %s193_s19, 4  ;;  %s42_s20 = int_to_ptr.vmem [resolvable:$true] %s41_s20 }
   0x8   :  { %47 = dma.hbm_to_vmem [thread:$0]  %s40_s16, 256, %s42_s20, [#allocation7], %s191_s17, %s191_s17, %s192_s18  }
   0x9   :  { %184 = dma.done.wait [#allocation4], 256  }
   0xa   :  { %185 = vsyncadd [#allocation4], 4294967040 }
   0xb   :  { %186 = dma.done.wait [#allocation7], 256  }
   0xc   :  { %187 = vsyncadd [#allocation7], 4294967040  ;;  %v69_v0 = vld [vmem:[#allocation3] sm:$0xff]  ;;  %v70_v1 = vld [vmem:[#allocation3 + $0x8] sm:$0xff]  ;;  %s101_s21 = sshll.u32 %s221_s2, 4  ;;  %s194_s23 = smov [#allocation8]   ;;  %s102_s21 = int_to_ptr.hbm [resolvable:$true] %s101_s21 }
   0xd   :  { %v71_v2 = vld [vmem:[#allocation6] sm:$0xff]  ;;  %v72_v3 = vld [vmem:[#allocation6 + $0x8] sm:$0xff] }
   0xe   :  { %v73_v4 = vsub.f32 %v69_v0, %v71_v2  ;;  %v74_v5 = vsub.f32 %v70_v1, %v72_v3 }
  0x10   :  { %v75_v6 = vmul.f32 %v73_v4, %v73_v4  ;;  %v76_v7 = vmul.f32 %v74_v5, %v74_v5 }
  0x12   :  { %v78_v8 = vadd.f32 %v76_v7, %v75_v6 }
  0x14   :  { %85 = vadd.xlane.f32.xlu0 %v78_v8 }
  0x87   :  { %v86_v9 = vpop.xlane.xlu0 %85 }
  0x88   :  { %v87_v10 = vrot.slane %v86_v9, 4 }
  0x8a   :  { %v88_v11 = vadd.f32 %v87_v10, %v86_v9 }
  0x8c   :  { %v89_v12 = vrot.slane %v88_v11, 2 }
  0x8e   :  { %v90_v13 = vadd.f32 %v89_v12, %v88_v11 }
  0x90   :  { %v91_v14 = vrot.slane %v90_v13, 1 }
  0x92   :  { %v92_v15 = vadd.f32 %v91_v14, %v90_v13 }
  0x94   :  { %117 = vpush %v92_v15 }
  0xc5   :  { %s118_s22 = spop %117 }
  0xc6   :  { %95 = sst [smem:[#allocation8]] %s118_s22 }
  0xc7   :  { %104 = dma.smem_to_hbm %s194_s23, 16, %s102_s21, [#allocation5]  }
  0xc8   :  { %188 = dma.done.wait [#allocation5], 16  }
  0xc9   :  { %189 = vsyncadd [#allocation5], 4294967280 }
  0xca   :  { %109 = sfence }
  0xcb   :  { %110 = vsyncpa [#allocation4], 1 }
  0xcc   :  { %111 = vsyncpa [#allocation7], 1 }
  0xcd   :  { %112 = vsyncpa [#allocation5], 1 }

</bundles_post_ra>
